<compile_context>
chip_gen: v5e
topology: v5e:2x2
jax: 0.10.0
libtpu: 0.0.40
codegen_flags: <defaults>
</compile_context>

<pallas_src>
import jax
import jax.numpy as jnp
from jax import lax
from jax.experimental import pallas as pl
from jax.experimental.pallas import tpu as pltpu

EPS = 1e-5


def dqn_kernel(x_ref, w1_ref, w234_ref, bnb_ref, out_ref):
    x = x_ref[0].astype(jnp.float32)          # (in, B)  feature-major
    B = x.shape[1]
    inv_b = 1.0 / B                           # static batch size
    # Reduction RHS, hoisted once per kernel body (used by all three layers).
    ones_b = jnp.ones((B, 1), jnp.float32)

    bnb = bnb_ref[...]                        # (H, 8): g1 be1 g2 be2 g3 be3 b4 0
    out_rows = out_ref.shape[1]               # true output_size (un-padded)

    def linear_bn_relu(h_in, w, gamma, beta):
        # Linear (bias omitted: exactly cancelled by BN mean subtraction).
        h = jnp.dot(w, h_in, preferred_element_type=jnp.float32)      # (H, B)
        # One-pass batch statistics: a single MXU matmul reduces [h ; h*h]
        # over the lane (batch) axis, keeping the VPU/XLU free.
        cat = jnp.concatenate([h, h * h], axis=0)                     # (2H, B)
        sums = jnp.dot(cat, ones_b, preferred_element_type=jnp.float32)  # (2H, 1)
        H = h.shape[0]
        mu = sums[:H] * inv_b
        var = jnp.maximum(sums[H:] * inv_b - mu * mu, 0.0)
        # Fold BN into per-feature scale/shift columns, then one lane-broadcast
        # FMA + ReLU over the (H, B) tile.
        scale = gamma * lax.rsqrt(var + EPS)                          # (H, 1)
        shift = beta - mu * scale                                     # (H, 1)
        return jnp.maximum(h * scale + shift, 0.0)

    h1 = linear_bn_relu(x,  w1_ref[...],  bnb[:, 0:1], bnb[:, 1:2])
    h2 = linear_bn_relu(h1, w234_ref[0],  bnb[:, 2:3], bnb[:, 3:4])
    h3 = linear_bn_relu(h2, w234_ref[1],  bnb[:, 4:5], bnb[:, 5:6])

    # Final linear: w4 is zero-padded to (H, H); padded rows stay zero and are
    # sliced off before the (out, B) lane-dense store.
    out_full = jnp.dot(w234_ref[2], h3, preferred_element_type=jnp.float32)
    out_full = out_full + bnb[:, 6:7]
    out_ref[0] = out_full[:out_rows, :].astype(out_ref.dtype)


def pack_params(params):
    """Pack the many tiny parameter tensors into a few lane-friendly buffers.

    Weights are PyTorch-oriented (out_features, in_features)."""
    H = params["w1"].shape[0]
    out_size = params["w4"].shape[0]

    w4pad = jnp.zeros((H, H), jnp.float32).at[:out_size, :].set(params["w4"])
    w234 = jnp.stack([params["w2"], params["w3"], w4pad], axis=0)     # (3, H, H)

    bnb = jnp.zeros((H, 8), jnp.float32)
    bnb = bnb.at[:, 0].set(params["g1"]).at[:, 1].set(params["be1"])
    bnb = bnb.at[:, 2].set(params["g2"]).at[:, 3].set(params["be2"])
    bnb = bnb.at[:, 4].set(params["g3"]).at[:, 5].set(params["be3"])
    bnb = bnb.at[:out_size, 6].set(params["b4"])

    return {"w1": params["w1"], "w234": w234, "bnb": bnb,
            "hidden": H, "out_size": out_size}


def dqn_forward(x_std, packed):
    """x_std: (S, B, input_size) — S independent BN batches of B rows each."""
    S, B, In = x_std.shape
    H = packed["hidden"]
    out_size = packed["out_size"]

    # One wrapper-side transpose to feature-major (S, in, B).
    x = jnp.transpose(x_std, (0, 2, 1))

    out = pl.pallas_call(
        dqn_kernel,
        out_shape=jax.ShapeDtypeStruct((S, out_size, B), jnp.float32),
        grid=(S,),
        in_specs=[
            pl.BlockSpec((1, In, B), lambda s: (s, 0, 0)),   # streamed per step
            pl.BlockSpec((H, In),    lambda s: (0, 0)),      # resident weights
            pl.BlockSpec((3, H, H),  lambda s: (0, 0, 0)),
            pl.BlockSpec((H, 8),     lambda s: (0, 0)),
        ],
        out_specs=pl.BlockSpec((1, out_size, B), lambda s: (s, 0, 0)),
        compiler_params=pltpu.CompilerParams(
            dimension_semantics=("parallel",)),
    )(x, packed["w1"], packed["w234"], packed["bnb"])

    # Back to the standard (S, B, out) layout.
    return jnp.transpose(out, (0, 2, 1))


def init_params(key, input_size, size_hidden, output_size):
    """nn.Linear-style init (uniform +-1/sqrt(fan_in)); BN gamma=1, beta=0.
    Weights are (out_features, in_features) like PyTorch.  Biases b1..b3 are
    kept only for the pure-JAX reference (the kernel drops them because BN
    cancels them exactly)."""
    keys = jax.random.split(key, 8)
    params = {}

    def linear(kw, kb, fan_in, fan_out):
        bound = 1.0 / (fan_in ** 0.5)
        w = jax.random.uniform(kw, (fan_out, fan_in), jnp.float32, -bound, bound)
        b = jax.random.uniform(kb, (fan_out,), jnp.float32, -bound, bound)
        return w, b

    params["w1"], params["b1"] = linear(keys[0], keys[1], input_size, size_hidden)
    params["w2"], params["b2"] = linear(keys[2], keys[3], size_hidden, size_hidden)
    params["w3"], params["b3"] = linear(keys[4], keys[5], size_hidden, size_hidden)
    params["w4"], params["b4"] = linear(keys[6], keys[7], size_hidden, output_size)
    for i in (1, 2, 3):
        params[f"g{i}"] = jnp.ones((size_hidden,), jnp.float32)
        params[f"be{i}"] = jnp.zeros((size_hidden,), jnp.float32)
    return params


def dqn_reference(x_std, params):
    """Pure-JAX reference matching the PyTorch module (training-mode BN,
    biases included), applied independently to each of the S batches."""
    def one_batch(x):
        h = x.astype(jnp.float32)
        for i in (1, 2, 3):
            h = h @ params[f"w{i}"].T + params[f"b{i}"]
            mu = jnp.mean(h, axis=0, keepdims=True)
            var = jnp.mean((h - mu) ** 2, axis=0, keepdims=True)
            h = (h - mu) * lax.rsqrt(var + EPS) * params[f"g{i}"] + params[f"be{i}"]
            h = jnp.maximum(h, 0.0)
        return h @ params["w4"].T + params["b4"]
    return jax.vmap(one_batch)(x_std)


if __name__ == "__main__":
    key = jax.random.PRNGKey(0)
    k_par, k_x = jax.random.split(key)

    steps = 8            # stacked independent batches streamed through one call
    batch = 128          # BN batch; also fills the 128 lanes
    input_size = 16
    size_hidden = 32
    output_size = 4

    params = init_params(k_par, input_size, size_hidden, output_size)
    packed = pack_params(params)
    x = jax.random.normal(k_x, (steps, batch, input_size), jnp.float32)

    out = jax.block_until_ready(dqn_forward(x, packed))
    ref = dqn_reference(x, params)

    assert out.shape == (steps, batch, output_size)
    assert jnp.allclose(out, ref, atol=1e-4, rtol=1e-4)

    print("KERNEL_OK")
</pallas_src>

<mosaic_0001>
module attributes {stable_mosaic.version = 11 : i64} {
  func.func @dqn_kernel(%arg0: i32, %arg1: memref<1x16x128xf32, #tpu.memory_space<vmem>>, %arg2: memref<32x16xf32, #tpu.memory_space<vmem>>, %arg3: memref<3x32x32xf32, #tpu.memory_space<vmem>>, %arg4: memref<32x8xf32, #tpu.memory_space<vmem>>, %arg5: memref<1x4x128xf32, #tpu.memory_space<vmem>>) attributes {dimension_semantics = [#tpu.dimension_semantics<parallel>], iteration_bounds = array<i64: 8>, scalar_prefetch = 0 : i64, scratch_operands = 0 : i64, tpu.core_type = #tpu.core_type<tc>, window_params = [{transform_indices = @transform_0, window_bounds = array<i64: 1, 16, 128>}, {pipeline_mode = #tpu.pipeline_mode<synchronous>, transform_indices = @transform_1, window_bounds = array<i64: 32, 16>}, {pipeline_mode = #tpu.pipeline_mode<synchronous>, transform_indices = @transform_2, window_bounds = array<i64: 3, 32, 32>}, {pipeline_mode = #tpu.pipeline_mode<synchronous>, transform_indices = @transform_3, window_bounds = array<i64: 32, 8>}, {transform_indices = @transform_4, window_bounds = array<i64: 1, 4, 128>}]} {
    %c0 = arith.constant 0 : index
    %c0_0 = arith.constant 0 : index
    %c0_1 = arith.constant 0 : index
    %0 = vector.load %arg1[%c0, %c0_0, %c0_1] : memref<1x16x128xf32, #tpu.memory_space<vmem>>, vector<1x16x128xf32>
    %1 = vector.shape_cast %0 : vector<1x16x128xf32> to vector<16x128xf32>
    %cst = arith.constant 1.000000e+00 : f32
    %2 = vector.broadcast %cst : f32 to vector<128x1xf32>
    %c0_2 = arith.constant 0 : index
    %c0_3 = arith.constant 0 : index
    %3 = vector.load %arg4[%c0_2, %c0_3] : memref<32x8xf32, #tpu.memory_space<vmem>>, vector<32x8xf32>
    %c0_4 = arith.constant 0 : index
    %c0_5 = arith.constant 0 : index
    %4 = vector.load %arg2[%c0_4, %c0_5] : memref<32x16xf32, #tpu.memory_space<vmem>>, vector<32x16xf32>
    %5 = vector.extract_strided_slice %3 {offsets = [0, 0], sizes = [32, 1], strides = [1, 1]} : vector<32x8xf32> to vector<32x1xf32>
    %6 = vector.extract_strided_slice %3 {offsets = [0, 1], sizes = [32, 1], strides = [1, 1]} : vector<32x8xf32> to vector<32x1xf32>
    %cst_6 = arith.constant dense<0.000000e+00> : vector<32x128xf32>
    %7 = tpu.matmul %4, %1, %cst_6 {dimension_numbers = #tpu.dot_dimension_numbers<[1], [0], [0], [1], [0, 0, 1, 1], [], []>} : vector<32x16xf32>, vector<16x128xf32>, vector<32x128xf32> -> vector<32x128xf32>
    %8 = arith.mulf %7, %7 : vector<32x128xf32>
    %9 = tpu.concatenate %7, %8 in 0 : vector<32x128xf32>, vector<32x128xf32> -> vector<64x128xf32>
    %cst_7 = arith.constant dense<0.000000e+00> : vector<64x1xf32>
    %10 = tpu.matmul %9, %2, %cst_7 {dimension_numbers = #tpu.dot_dimension_numbers<[1], [0], [0], [1], [0, 0, 1, 1], [], []>} : vector<64x128xf32>, vector<128x1xf32>, vector<64x1xf32> -> vector<64x1xf32>
    %11 = vector.extract_strided_slice %10 {offsets = [0, 0], sizes = [32, 1], strides = [1, 1]} : vector<64x1xf32> to vector<32x1xf32>
    %cst_8 = arith.constant 7.812500e-03 : f32
    %12 = vector.broadcast %cst_8 : f32 to vector<32x1xf32>
    %13 = arith.mulf %11, %12 : vector<32x1xf32>
    %14 = vector.extract_strided_slice %10 {offsets = [32, 0], sizes = [32, 1], strides = [1, 1]} : vector<64x1xf32> to vector<32x1xf32>
    %cst_9 = arith.constant 7.812500e-03 : f32
    %15 = vector.broadcast %cst_9 : f32 to vector<32x1xf32>
    %16 = arith.mulf %14, %15 : vector<32x1xf32>
    %17 = arith.mulf %13, %13 : vector<32x1xf32>
    %18 = arith.subf %16, %17 : vector<32x1xf32>
    %cst_10 = arith.constant 0.000000e+00 : f32
    %19 = vector.broadcast %cst_10 : f32 to vector<32x1xf32>
    %20 = arith.maximumf %18, %19 : vector<32x1xf32>
    %cst_11 = arith.constant 9.99999974E-6 : f32
    %21 = vector.broadcast %cst_11 : f32 to vector<32x1xf32>
    %22 = arith.addf %20, %21 : vector<32x1xf32>
    %23 = math.rsqrt %22 : vector<32x1xf32>
    %24 = arith.mulf %5, %23 : vector<32x1xf32>
    %25 = arith.mulf %13, %24 : vector<32x1xf32>
    %26 = arith.subf %6, %25 : vector<32x1xf32>
    %27 = vector.broadcast %24 : vector<32x1xf32> to vector<32x128xf32>
    %28 = arith.mulf %7, %27 : vector<32x128xf32>
    %29 = vector.broadcast %26 : vector<32x1xf32> to vector<32x128xf32>
    %30 = arith.addf %28, %29 : vector<32x128xf32>
    %cst_12 = arith.constant 0.000000e+00 : f32
    %31 = vector.broadcast %cst_12 : f32 to vector<32x128xf32>
    %32 = arith.maximumf %30, %31 : vector<32x128xf32>
    %c0_13 = arith.constant 0 : index
    %c0_14 = arith.constant 0 : index
    %c0_15 = arith.constant 0 : index
    %33 = vector.load %arg3[%c0_13, %c0_14, %c0_15] : memref<3x32x32xf32, #tpu.memory_space<vmem>>, vector<1x32x32xf32>
    %34 = vector.shape_cast %33 : vector<1x32x32xf32> to vector<32x32xf32>
    %35 = vector.extract_strided_slice %3 {offsets = [0, 2], sizes = [32, 1], strides = [1, 1]} : vector<32x8xf32> to vector<32x1xf32>
    %36 = vector.extract_strided_slice %3 {offsets = [0, 3], sizes = [32, 1], strides = [1, 1]} : vector<32x8xf32> to vector<32x1xf32>
    %cst_16 = arith.constant dense<0.000000e+00> : vector<32x128xf32>
    %37 = tpu.matmul %34, %32, %cst_16 {dimension_numbers = #tpu.dot_dimension_numbers<[1], [0], [0], [1], [0, 0, 1, 1], [], []>} : vector<32x32xf32>, vector<32x128xf32>, vector<32x128xf32> -> vector<32x128xf32>
    %38 = arith.mulf %37, %37 : vector<32x128xf32>
    %39 = tpu.concatenate %37, %38 in 0 : vector<32x128xf32>, vector<32x128xf32> -> vector<64x128xf32>
    %cst_17 = arith.constant dense<0.000000e+00> : vector<64x1xf32>
    %40 = tpu.matmul %39, %2, %cst_17 {dimension_numbers = #tpu.dot_dimension_numbers<[1], [0], [0], [1], [0, 0, 1, 1], [], []>} : vector<64x128xf32>, vector<128x1xf32>, vector<64x1xf32> -> vector<64x1xf32>
    %41 = vector.extract_strided_slice %40 {offsets = [0, 0], sizes = [32, 1], strides = [1, 1]} : vector<64x1xf32> to vector<32x1xf32>
    %cst_18 = arith.constant 7.812500e-03 : f32
    %42 = vector.broadcast %cst_18 : f32 to vector<32x1xf32>
    %43 = arith.mulf %41, %42 : vector<32x1xf32>
    %44 = vector.extract_strided_slice %40 {offsets = [32, 0], sizes = [32, 1], strides = [1, 1]} : vector<64x1xf32> to vector<32x1xf32>
    %cst_19 = arith.constant 7.812500e-03 : f32
    %45 = vector.broadcast %cst_19 : f32 to vector<32x1xf32>
    %46 = arith.mulf %44, %45 : vector<32x1xf32>
    %47 = arith.mulf %43, %43 : vector<32x1xf32>
    %48 = arith.subf %46, %47 : vector<32x1xf32>
    %cst_20 = arith.constant 0.000000e+00 : f32
    %49 = vector.broadcast %cst_20 : f32 to vector<32x1xf32>
    %50 = arith.maximumf %48, %49 : vector<32x1xf32>
    %cst_21 = arith.constant 9.99999974E-6 : f32
    %51 = vector.broadcast %cst_21 : f32 to vector<32x1xf32>
    %52 = arith.addf %50, %51 : vector<32x1xf32>
    %53 = math.rsqrt %52 : vector<32x1xf32>
    %54 = arith.mulf %35, %53 : vector<32x1xf32>
    %55 = arith.mulf %43, %54 : vector<32x1xf32>
    %56 = arith.subf %36, %55 : vector<32x1xf32>
    %57 = vector.broadcast %54 : vector<32x1xf32> to vector<32x128xf32>
    %58 = arith.mulf %37, %57 : vector<32x128xf32>
    %59 = vector.broadcast %56 : vector<32x1xf32> to vector<32x128xf32>
    %60 = arith.addf %58, %59 : vector<32x128xf32>
    %cst_22 = arith.constant 0.000000e+00 : f32
    %61 = vector.broadcast %cst_22 : f32 to vector<32x128xf32>
    %62 = arith.maximumf %60, %61 : vector<32x128xf32>
    %c1 = arith.constant 1 : index
    %c0_23 = arith.constant 0 : index
    %c0_24 = arith.constant 0 : index
    %63 = vector.load %arg3[%c1, %c0_23, %c0_24] : memref<3x32x32xf32, #tpu.memory_space<vmem>>, vector<1x32x32xf32>
    %64 = vector.shape_cast %63 : vector<1x32x32xf32> to vector<32x32xf32>
    %65 = vector.extract_strided_slice %3 {offsets = [0, 4], sizes = [32, 1], strides = [1, 1]} : vector<32x8xf32> to vector<32x1xf32>
    %66 = vector.extract_strided_slice %3 {offsets = [0, 5], sizes = [32, 1], strides = [1, 1]} : vector<32x8xf32> to vector<32x1xf32>
    %cst_25 = arith.constant dense<0.000000e+00> : vector<32x128xf32>
    %67 = tpu.matmul %64, %62, %cst_25 {dimension_numbers = #tpu.dot_dimension_numbers<[1], [0], [0], [1], [0, 0, 1, 1], [], []>} : vector<32x32xf32>, vector<32x128xf32>, vector<32x128xf32> -> vector<32x128xf32>
    %68 = arith.mulf %67, %67 : vector<32x128xf32>
    %69 = tpu.concatenate %67, %68 in 0 : vector<32x128xf32>, vector<32x128xf32> -> vector<64x128xf32>
    %cst_26 = arith.constant dense<0.000000e+00> : vector<64x1xf32>
    %70 = tpu.matmul %69, %2, %cst_26 {dimension_numbers = #tpu.dot_dimension_numbers<[1], [0], [0], [1], [0, 0, 1, 1], [], []>} : vector<64x128xf32>, vector<128x1xf32>, vector<64x1xf32> -> vector<64x1xf32>
    %71 = vector.extract_strided_slice %70 {offsets = [0, 0], sizes = [32, 1], strides = [1, 1]} : vector<64x1xf32> to vector<32x1xf32>
    %cst_27 = arith.constant 7.812500e-03 : f32
    %72 = vector.broadcast %cst_27 : f32 to vector<32x1xf32>
    %73 = arith.mulf %71, %72 : vector<32x1xf32>
    %74 = vector.extract_strided_slice %70 {offsets = [32, 0], sizes = [32, 1], strides = [1, 1]} : vector<64x1xf32> to vector<32x1xf32>
    %cst_28 = arith.constant 7.812500e-03 : f32
    %75 = vector.broadcast %cst_28 : f32 to vector<32x1xf32>
    %76 = arith.mulf %74, %75 : vector<32x1xf32>
    %77 = arith.mulf %73, %73 : vector<32x1xf32>
    %78 = arith.subf %76, %77 : vector<32x1xf32>
    %cst_29 = arith.constant 0.000000e+00 : f32
    %79 = vector.broadcast %cst_29 : f32 to vector<32x1xf32>
    %80 = arith.maximumf %78, %79 : vector<32x1xf32>
    %cst_30 = arith.constant 9.99999974E-6 : f32
    %81 = vector.broadcast %cst_30 : f32 to vector<32x1xf32>
    %82 = arith.addf %80, %81 : vector<32x1xf32>
    %83 = math.rsqrt %82 : vector<32x1xf32>
    %84 = arith.mulf %65, %83 : vector<32x1xf32>
    %85 = arith.mulf %73, %84 : vector<32x1xf32>
    %86 = arith.subf %66, %85 : vector<32x1xf32>
    %87 = vector.broadcast %84 : vector<32x1xf32> to vector<32x128xf32>
    %88 = arith.mulf %67, %87 : vector<32x128xf32>
    %89 = vector.broadcast %86 : vector<32x1xf32> to vector<32x128xf32>
    %90 = arith.addf %88, %89 : vector<32x128xf32>
    %cst_31 = arith.constant 0.000000e+00 : f32
    %91 = vector.broadcast %cst_31 : f32 to vector<32x128xf32>
    %92 = arith.maximumf %90, %91 : vector<32x128xf32>
    %c2 = arith.constant 2 : index
    %c0_32 = arith.constant 0 : index
    %c0_33 = arith.constant 0 : index
    %93 = vector.load %arg3[%c2, %c0_32, %c0_33] : memref<3x32x32xf32, #tpu.memory_space<vmem>>, vector<1x32x32xf32>
    %94 = vector.shape_cast %93 : vector<1x32x32xf32> to vector<32x32xf32>
    %cst_34 = arith.constant dense<0.000000e+00> : vector<32x128xf32>
    %95 = tpu.matmul %94, %92, %cst_34 {dimension_numbers = #tpu.dot_dimension_numbers<[1], [0], [0], [1], [0, 0, 1, 1], [], []>} : vector<32x32xf32>, vector<32x128xf32>, vector<32x128xf32> -> vector<32x128xf32>
    %96 = vector.extract_strided_slice %3 {offsets = [0, 6], sizes = [32, 1], strides = [1, 1]} : vector<32x8xf32> to vector<32x1xf32>
    %97 = vector.broadcast %96 : vector<32x1xf32> to vector<32x128xf32>
    %98 = arith.addf %95, %97 : vector<32x128xf32>
    %99 = vector.extract_strided_slice %98 {offsets = [0, 0], sizes = [4, 128], strides = [1, 1]} : vector<32x128xf32> to vector<4x128xf32>
    %c0_35 = arith.constant 0 : index
    %c0_36 = arith.constant 0 : index
    %c0_37 = arith.constant 0 : index
    %100 = vector.load %arg5[%c0_35, %c0_36, %c0_37] : memref<1x4x128xf32, #tpu.memory_space<vmem>>, vector<1x4x128xf32>
    %101 = vector.shape_cast %100 : vector<1x4x128xf32> to vector<4x128xf32>
    %102 = vector.shape_cast %99 : vector<4x128xf32> to vector<1x4x128xf32>
    tpu.vector_store %arg5[%c0_35, %c0_36, %c0_37], %102 {strides = array<i32>} : memref<1x4x128xf32, #tpu.memory_space<vmem>>, vector<1x4x128xf32>,
    return
  }
  func.func @transform_0(%arg0: i32) -> (i32, i32, i32) {
    %c0_i32 = arith.constant 0 : i32
    %c0_i32_0 = arith.constant 0 : i32
    %c0_i32_1 = arith.constant 0 : i32
    return %arg0, %c0_i32, %c0_i32_0 : i32, i32, i32
  }
  func.func @transform_1(%arg0: i32) -> (i32, i32) {
    %c0_i32 = arith.constant 0 : i32
    %c0_i32_0 = arith.constant 0 : i32
    %c0_i32_1 = arith.constant 0 : i32
    return %c0_i32, %c0_i32_0 : i32, i32
  }
  func.func @transform_2(%arg0: i32) -> (i32, i32, i32) {
    %c0_i32 = arith.constant 0 : i32
    %c0_i32_0 = arith.constant 0 : i32
    %c0_i32_1 = arith.constant 0 : i32
    %c0_i32_2 = arith.constant 0 : i32
    return %c0_i32, %c0_i32_0, %c0_i32_1 : i32, i32, i32
  }
  func.func @transform_3(%arg0: i32) -> (i32, i32) {
    %c0_i32 = arith.constant 0 : i32
    %c0_i32_0 = arith.constant 0 : i32
    %c0_i32_1 = arith.constant 0 : i32
    return %c0_i32, %c0_i32_0 : i32, i32
  }
  func.func @transform_4(%arg0: i32) -> (i32, i32, i32) {
    %c0_i32 = arith.constant 0 : i32
    %c0_i32_0 = arith.constant 0 : i32
    %c0_i32_1 = arith.constant 0 : i32
    return %arg0, %c0_i32, %c0_i32_0 : i32, i32, i32
  }
}

</mosaic_0001>

<bundles_post_ra>
// kernel: tpu_custom_call.1
= control target key start
LH: loop header
LB: loop body
LE: loop exit
PB: predicated region body
PF: predicated region fallthrough
CT: control target
= control target key end

     0   :  { %9 = vsyncpa [#allocation3], 0  ;;  %s1868_s0 = inlined_call_operand.hbm [shape: f32[8,16,128], index: 0, kind: input, shape index: {}]   ;;  %s1869_s1 = inlined_call_operand.vmem [shape: f32[32,16], index: 1, kind: input, shape index: {}]   ;;  %s1870_s2 = inlined_call_operand.hbm [shape: f32[3,32,32], index: 2, kind: input, shape index: {}]   ;;  %s1871_s3 = inlined_call_operand.vmem [shape: f32[32,8], index: 3, kind: input, shape index: {}]   ;;  %s1872_s4 = inlined_call_operand.hbm [shape: f32[8,4,128], index: 4, kind: output, shape index: {}]  }
   0x1   :  { %11 = vsyncpa [#allocation3 + $0x1], 0 }
   0x2   :  { %12 = vsyncpa [#allocation6], 0 }
   0x3   :  { %13 = vsyncpa [#allocation4], 0 }
   0x4   :  { %15 = vsyncpa [#allocation4 + $0x1], 0  ;;  %s1478_s15 = smov 0   ;;  %s1480_s16 = smov 0  }
   0x5   :  { %s1482_s17 = smov 0   ;;  %s1484_s18 = smov 0  }
   0x6 LB: > { %s1499_s19 = sadd.s32 4294967295, %s1433_s18   ;;  %s1159_s20 = sadd.s32 4294967294, %s1433_s18   ;;  %s1433_s18 = sphi %s1484_s18, %s1881_s18   ;;  %s1429_s17 = sphi %s1482_s17, %s1880_s17   ;;  %s1425_s16 = sphi %s1480_s16, %s1879_s16   ;;  %s1421_s15 = sphi %s1478_s15, %s1878_s15  }
   0x7   : > { %p41_p0 = scmp.ne.s32.totalorder %s1425_s16, %s1421_s15  ;;  %p42_p1 = scmp.eq.s32.totalorder %s1499_s19, 0 }
   0x8   : > { %p128_p2 = scmp.eq.s32.totalorder %s1499_s19, 7  ;;  %p134_p3 = scmp.eq.s32.totalorder %s1159_s20, 7 }
   0x9   : > { %p1508_p4 = por %p42_p1, %p41_p0  ;;  %p1160_p5 = scmp.ge.s32.totalorder %s1433_s18, 1 }
   0xa   : > { %p1513_p6 = por %p134_p3, %p41_p0  ;;  %p141_p7 = scmp.lt.s32.totalorder %s1433_s18, 9 }
   0xb   : > { %s155_s25 = sshll.u32 %s1870_s2, 4  ;;  %s1435_s27 = smov [#allocation5]   ;;  %s156_s25 = int_to_ptr.hbm [resolvable:$true] %s155_s25 }
   0xc   : > { %p1521_p8 = pnand %p1160_p5, %p141_p7  ;;  %s157_s28 = sshll.u32 %s1435_s27, 4  ;;  %s158_s28 = int_to_ptr.vmem [resolvable:$true] %s157_s28 }
   0xd   : > { %s1530_s29 = sadd.s32 1, %s1433_s18   ;;  %s1436_s30 = smov 128  }
   0xe   : > { %p1199_p9 = pneg %p1521_p8  ;;  %s1437_s5 = smov 8  }
   0xf   : > { %s25_s6 = ssub.s32 %s1433_s18, %s1530_s29  ;;  %s28_s7 = sadd.s32 1, %s1429_s17 }
  0x10   : > { %p1200_p10 = pnand %p1199_p9, %p42_p1  ;;  %p26_p11 = scmp.eq.s32.totalorder %s25_s6, 0 }
  0x11   : > { %p35_p12 = scmp.ne.s32.totalorder %s1429_s17, %s1425_s16  ;;  %p36_p13 = scmp.eq.s32.totalorder %s1433_s18, 0 }
  0x12   : > { %1202 = dma.hbm_to_vmem [thread:$0]  (!%p1200_p10), %s156_s25, 1536, %s158_s28, [#allocation6], %s1436_s30, %s1436_s30, %s1437_s5  }
  0x13   : > { %s1542_s8 = scalar_select %p26_p11, %s1429_s17, %s28_s7  }
  0x14   : > { %p1546_p0 = por %p128_p2, %p35_p12  ;;  %p1212_p3 = scmp.lt.s32.totalorder %s1433_s18, 8 }
  0x15   : > { %s174_s10 = sand.u32 1, %s1429_s17   ;;  %s1190_s11 = sshll.u32 %s1433_s18, 4 }
  0x16   : > { %p37_p5 = por %p36_p13, %p35_p12  ;;  %s1163_s12 = sshll.u32 %s174_s10, 4 }
  0x17   : > { %s183_s20 = scalar_lea.hbm %s1868_s0, %s1190_s11  ;;  %s178_s24 = scalar_lea.vmem [#allocation2], %s1163_s12 }
  0x18   : > { %s184_s23 = sshll.u32 %s183_s20, 4  ;;  %s186_s25 = sshll.u32 %s178_s24, 4  ;;  %s185_s23 = int_to_ptr.hbm [resolvable:$true] %s184_s23  ;;  %s187_s25 = int_to_ptr.vmem [resolvable:$true] %s186_s25 }
  0x19   : > { %p1556_p7 = pnand %p1212_p3, %p37_p5  ;;  %s175_s28 = scalar_lea.sflag [#allocation3], %s174_s10 }
  0x1a   : > { %s1333_s6 = sshra.s32 %s185_s23, 4  ;;  %s1340_s12 = scalar_lea.hbm %s1868_s0, 128  ;;  %s1334_s6 = int_to_ptr.hbm [resolvable:$true] %s1333_s6 }
  0x1b   : > { %s1335_s7 = scalar_lea.hbm %s1334_s6, 16  ;;  %p1337_p9 = pneg %p1556_p7 }
  0x1c   : > { %p1336_p2 = scmp.ne.s32.totalorder %s1334_s6, %s1335_s7  ;;  %p1341_p12 = scmp.lt.s32.totalorder %s1334_s6, %s1868_s0 }
  0x1d   : > { %p1342_p13 = scmp.lt.s32.totalorder %s1340_s12, %s1335_s7 }
  0x1e   : > { %p1338_p10 = pnand %p1337_p9, %p1336_p2 }
  0x1f   : > { %p1343_p3 = por %p1342_p13, %p1341_p12 }
  0x20   : > { %p1339_p11 = pneg %p1338_p10 }
  0x22   : > { %p1344_p5 = pnand %p1343_p3, %p1339_p11 }
  0x24   : > { %1347 = shalt.err (!%p1344_p5)
}
  0x25   : > { %1206 = dma.hbm_to_vmem [thread:$0]  (!%p1556_p7), %s185_s23, 256, %s187_s25, %s175_s28, %s1436_s30, %s1436_s30, %s1437_s5  }
  0x26   : > { %198 = sbr.rel (%p1521_p8) target bundleno = 2381 (0x94d), region = 36  ;;  %s1576_s10 = sand.u32 (!%p1521_p8), 1, %s1425_s16  }
  0x27   : > { %s1167_s24 = sshll.u32 (!%p1521_p8), %s1576_s10, 4  ;;  %s201_s6 = scalar_lea.sflag (!%p1521_p8), [#allocation3], %s1576_s10 }
  0x28   : > { %s204_s7 = scalar_lea.vmem (!%p1521_p8), [#allocation2], %s1167_s24 }
  0x2b   : > { %1408 = dma.done.wait (%p1508_p4), %s201_s6, 256  }
  0x2c   : > { %1410 = vsyncadd (%p1508_p4), %s201_s6, 4294967040 }
  0x2d   : > { %1412 = dma.done.wait (%p42_p1), [#allocation6], 1536  }
  0x2e   : > { %1414 = vsyncadd (%p42_p1), [#allocation6], 4294965760  ;;  %v1438_v0 = vmov 1.0   ;;  %v236_v1 = vld [vmem:[%s204_s7 + $0x8] sm:$0xff]  ;;  %v235_v2 = vld [vmem:[%s204_s7] sm:$0xff]  ;;  %vm245_vm0 = vcmask 130048  }
  0x2f   : > { %291 = vmatpush.msra.mxu1 %v1438_v0  ;;  %526 = vmatpush.msra.mxu3 %v1438_v0  ;;  %v241_v3 = vld [vmem:[%s1869_s1] sm:$0xff]  ;;  %v242_v4 = vld [vmem:[%s1869_s1 + $0x8] sm:$0xff]  ;;  %v243_v5 = vld [vmem:[%s1869_s1 + $0x10] sm:$0xff]  ;;  %v1439_v36 = vmov 0   ;;  %s1440_s20 = smov 1   ;;  %vm480_vm13 = vcmask 261120  }
  0x30   : > { %272 = vmatpush.msra.mxu0 %v236_v1  ;;  %v244_v6 = vld [vmem:[%s1869_s1 + $0x18] sm:$0xff]  ;;  %1265 = vset.pattern.permute.xlu2 %v1439_v36  ;;  %v1667_v59 = vld [vmem:[%s1871_s3 + $0x8] sm:$0xff]  ;;  %s1442_s26 = smov 2   ;;  %s1443_s30 = smov 126  }
  0x31   : > { %292 = vmatpush.msra.mxu1 %v1438_v0  ;;  %527 = vmatpush.msra.mxu3 %v1438_v0  ;;  %s1445_s5 = smov 3   ;;  %s1447_s23 = smov 4  }
  0x32   : > { %273 = vmatpush.msra.mxu0 %v235_v2  ;;  %1266 = vset.pattern.permute.xlu1 %v1439_v36  ;;  %s1448_s25 = smov 124   ;;  %s1450_s27 = smov 5  }
  0x33   : > { %293 = vmatpush.msra.mxu1 %v1438_v0  ;;  %528 = vmatpush.msra.mxu3 %v1438_v0  ;;  %s1187_s28 = sshll.u32 %s1499_s19, 2  ;;  %s1169_s11 = sshll.u32 %s1576_s10, 2 }
  0x34   : > { %1170 = vmatmul.msk.f32.vlgmr.msra.gmra.mxu0 %vm245_vm0, %v241_v3  ;;  %s1074_s14 = scalar_lea.hbm %s1872_s4, %s1187_s28  ;;  %s1064_s7 = scalar_lea.sflag [#allocation4], %s1576_s10 }
  0x35   : > { %294 = vmatpush.msra.mxu1 %v1438_v0  ;;  %529 = vmatpush.msra.mxu3 %v1438_v0  ;;  %s1078_s6 = sshll.u32 %s1074_s14, 4  ;;  %s1079_s6 = int_to_ptr.hbm [resolvable:$true] %s1078_s6 }
  0x36   : > { %s1377_s21 = sshra.s32 %s1079_s6, 4  ;;  %s1378_s21 = int_to_ptr.hbm [resolvable:$true] %s1377_s21 }
  0x37   : > { %295 = vmatpush.msra.mxu1 %v1438_v0  ;;  %530 = vmatpush.msra.mxu3 %v1438_v0  ;;  %p1384_p7 = scmp.lt.s32.totalorder %s1378_s21, %s1872_s4 }
  0x39   : > { %296 = vmatpush.msra.mxu1 %v1438_v0  ;;  %531 = vmatpush.msra.mxu3 %v1438_v0 }
  0x3b   : > { %297 = vmatpush.msra.mxu1 %v1438_v0  ;;  %532 = vmatpush.msra.mxu3 %v1438_v0 }
  0x3c   : > { %1171 = vmatmul.msk.f32.gmra.mxu0 %vm245_vm0, %v242_v4  ;;  %v1673_v4 = vld [vmem:[%s1871_s3] sm:$0xff] }
  0x3d   : > { %298 = vmatpush.msra.mxu1 %v1438_v0  ;;  %533 = vmatpush.msra.mxu3 %v1438_v0 }
  0x3f   : > { %299 = vmatpush.msra.mxu1 %v1438_v0  ;;  %534 = vmatpush.msra.mxu3 %v1438_v0 }
  0x41   : > { %300 = vmatpush.msra.mxu1 %v1438_v0  ;;  %535 = vmatpush.msra.mxu3 %v1438_v0 }
  0x43   : > { %301 = vmatpush.msra.mxu1 %v1438_v0  ;;  %536 = vmatpush.msra.mxu3 %v1438_v0 }
  0x44   : > { %1172 = vmatmul.msk.f32.gmra.mxu0 %vm245_vm0, %v243_v5 }
  0x45   : > { %302 = vmatpush.msra.mxu1 %v1438_v0  ;;  %537 = vmatpush.msra.mxu3 %v1438_v0 }
  0x47   : > { %303 = vmatpush.msra.mxu1 %v1438_v0  ;;  %538 = vmatpush.msra.mxu3 %v1438_v0 }
  0x49   : > { %304 = vmatpush.msra.mxu1 %v1438_v0  ;;  %539 = vmatpush.msra.mxu3 %v1438_v0 }
  0x4b   : > { %305 = vmatpush.msra.mxu1 %v1438_v0  ;;  %540 = vmatpush.msra.mxu3 %v1438_v0 }
  0x4c   : > { %1173 = vmatmul.msk.f32.gmra.mxu0 %vm245_vm0, %v244_v6 }
  0x4d   : > { %306 = vmatpush.msra.mxu1 %v1438_v0  ;;  %541 = vmatpush.msra.mxu3 %v1438_v0 }
  0xb1   : > { %v1636_v7 = vpop.f32.mrf.mxu0 }
  0xb2   : > { %307 = vmatmul.f32.vlgmr.msra.gmra.mxu1 %v1636_v7  ;;  %v287_v11 = vmul.f32 %v1636_v7, %v1636_v7 }
  0xb9   : > { %v1639_v8 = vpop.f32.mrf.mxu0 }
  0xba   : > { %310 = vmatmul.f32.gmra.mxu1 %v1639_v8  ;;  %v288_v12 = vmul.f32 %v1639_v8, %v1639_v8 }
  0xc1   : > { %v1642_v9 = vpop.f32.mrf.mxu0 }
  0xc2   : > { %313 = vmatmul.f32.gmra.mxu1 %v1642_v9  ;;  %v289_v13 = vmul.f32 %v1642_v9, %v1642_v9 }
  0xc9   : > { %v1645_v10 = vpop.f32.mrf.mxu0 }
  0xca   : > { %316 = vmatmul.f32.gmra.mxu1 %v1645_v10  ;;  %v290_v14 = vmul.f32 %v1645_v10, %v1645_v10 }
  0xd2   : > { %319 = vmatmul.f32.gmra.mxu1 %v287_v11 }
  0xda   : > { %322 = vmatmul.f32.gmra.mxu1 %v288_v12 }
  0xe2   : > { %325 = vmatmul.f32.gmra.mxu1 %v289_v13 }
  0xea   : > { %328 = vmatmul.f32.gmra.mxu1 %v290_v14 }
 0x12f   : > { %v308_v15 = vpop.f32.mrf.mxu1 }
 0x130   : > { %v1656_v19 = vmul.f32 0.0078125, %v308_v15 }
 0x132   : > { %v340_v21 = vmul.f32 %v1656_v19, %v1656_v19 }
 0x137   : > { %v311_v16 = vpop.f32.mrf.mxu1 }
 0x138   : > { %v333_v24 = vmul.f32 0.0078125, %v311_v16 }
 0x13a   : > { %v341_v28 = vmul.f32 %v333_v24, %v333_v24 }
 0x13f   : > { %v314_v17 = vpop.f32.mrf.mxu1 }
 0x140   : > { %v1660_v31 = vmul.f32 0.0078125, %v314_v17 }
 0x142   : > { %v342_v37 = vmul.f32 %v1660_v31, %v1660_v31 }
 0x147   : > { %v317_v18 = vpop.f32.mrf.mxu1 }
 0x148   : > { %v335_v41 = vmul.f32 0.0078125, %v317_v18 }
 0x14a   : > { %v343_v48 = vmul.f32 %v335_v41, %v335_v41 }
 0x14f   : > { %v320_v20 = vpop.f32.mrf.mxu1 }
 0x150   : > { %v336_v22 = vmul.f32 0.0078125, %v320_v20  ;;  %v1682_v20 = vld [vmem:[%s1871_s3 + $0x18] sm:$0xff] }
 0x152   : > { %v344_v23 = vsub.f32 %v336_v22, %v340_v21 }
 0x154   : > { %v348_v25 = vmax.f32 %v344_v23, 0.0 }
 0x156   : > { %v352_v26 = vadd.f32 1e-05, %v348_v25  ;;  %v1688_v25 = vld [vmem:[%s1871_s3 + $0x10] sm:$0xff] }
 0x157   : > { %v323_v27 = vpop.f32.mrf.mxu1 }
 0x158   : > { %1279 = vrsqrt.f32 %v352_v26  ;;  %v337_v29 = vmul.f32 0.0078125, %v323_v27  ;;  %vm362_vm5 = vweird.f32 %v352_v26 }
 0x15a   : > { %v345_v30 = vsub.f32 %v337_v29, %v341_v28  ;;  %v1441_v29 = vmov 1  }
 0x15b   : > { %1268 = vset.pattern.permute.xlu0 %v1441_v29 }
 0x15c   : > { %v349_v32 = vmax.f32 %v345_v30, 0.0 }
 0x15e   : > { %v1280_v33 = vpop.eup %1279  ;;  %v353_v34 = vadd.f32 1e-05, %v349_v32 }
 0x15f   : > { %v326_v35 = vpop.f32.mrf.mxu1  ;;  %v357_v39 = vmul.f32 %v1280_v33, %v352_v26  ;;  %vm363_vm4 = vweird.f32 %v1280_v33 }
 0x160   : > { %1281 = vrsqrt.f32 %v353_v34  ;;  %v338_v38 = vmul.f32 0.0078125, %v326_v35  ;;  %vm372_vm2 = vweird.f32 %v353_v34  ;;  %vm364_vm6 = vmor %vm362_vm5, %vm363_vm4 }
 0x161   : > { %v358_v43 = vmul.f32 %v1280_v33, %v357_v39 }
 0x162   : > { %v346_v40 = vsub.f32 %v338_v38, %v342_v37 }
 0x163   : > { %v359_v50 = vmul.f32 0.5, %v358_v43 }
 0x164   : > { %v350_v42 = vmax.f32 %v346_v40, 0.0 }
 0x165   : > { %v360_v55 = vsub.f32 1.5, %v359_v50 }
 0x166   : > { %v1282_v44 = vpop.eup %1281  ;;  %v354_v45 = vadd.f32 1e-05, %v350_v42 }
 0x167   : > { %v367_v46 = vmul.f32 %v1282_v44, %v353_v34  ;;  %v329_v47 = vpop.f32.mrf.mxu1  ;;  %vm373_vm1 = vweird.f32 %v1282_v44  ;;  %v361_v63 = vmul.f32 %v1280_v33, %v360_v55 }
 0x168   : > { %1283 = vrsqrt.f32 %v354_v45  ;;  %v339_v49 = vmul.f32 0.0078125, %v329_v47  ;;  %vm374_vm3 = vmor %vm372_vm2, %vm373_vm1  ;;  %vm382_vm11 = vweird.f32 %v354_v45 }
 0x169   : > { %v368_v51 = vmul.f32 %v1282_v44, %v367_v46  ;;  %v365_v5 = vsel %vm364_vm6, %v1280_v33, %v361_v63 }
 0x16a   : > { %v347_v52 = vsub.f32 %v339_v49, %v343_v48  ;;  %v396_v12 = vmul.f32 %v365_v5, %v1673_v4 }
 0x16b   : > { %v369_v53 = vmul.f32 0.5, %v368_v51 }
 0x16c   : > { %v351_v54 = vmax.f32 %v347_v52, 0.0  ;;  %v400_v16 = vmul.f32 %v396_v12, %v1656_v19 }
 0x16d   : > { %v370_v56 = vsub.f32 1.5, %v369_v53 }
 0x16e   : > { %v1284_v57 = vpop.eup %1283  ;;  %v355_v58 = vadd.f32 1e-05, %v351_v54 }
 0x16f   : > { %v371_v60 = vmul.f32 %v1282_v44, %v370_v56  ;;  %v377_v61 = vmul.f32 %v1284_v57, %v354_v45  ;;  %vm383_vm10 = vweird.f32 %v1284_v57 }
 0x170   : > { %1285 = vrsqrt.f32 %v355_v58  ;;  %vm392_vm8 = vweird.f32 %v355_v58  ;;  %vm384_vm12 = vmor %vm382_vm11, %vm383_vm10 }
 0x171   : > { %v375_v62 = vsel %vm374_vm3, %v1282_v44, %v371_v60  ;;  %v378_v3 = vmul.f32 %v1284_v57, %v377_v61 }
 0x172   : > { %v397_v1 = vmul.f32 %v375_v62, %v1667_v59 }
 0x173   : > { %v379_v13 = vmul.f32 0.5, %v378_v3 }
 0x174   : > { %v401_v2 = vmul.f32 %v397_v1, %v333_v24 }
 0x175   : > { %v380_v17 = vsub.f32 1.5, %v379_v13 }
 0x176   : > { %v1286_v6 = vpop.eup %1285  ;;  %410 = vrot.lane.b32.xlu1 %v401_v2, %s1440_s20 }
 0x177   : > { %v387_v11 = vmul.f32 %v1286_v6, %v355_v58  ;;  %vm393_vm7 = vweird.f32 %v1286_v6  ;;  %v381_v23 = vmul.f32 %v1284_v57, %v380_v17 }
 0x178   : > { %vm394_vm9 = vmor %vm392_vm8, %vm393_vm7 }
 0x179   : > { %v388_v14 = vmul.f32 %v1286_v6, %v387_v11  ;;  %v385_v26 = vsel %vm384_vm12, %v1284_v57, %v381_v23  ;;  %v479_v57 = vld [vmem:[#allocation5 + $0x18] sm:$0xff] }
 0x17a   : > { %v398_v27 = vmul.f32 %v385_v26, %v1688_v25 }
 0x17b   : > { %v389_v15 = vmul.f32 0.5, %v388_v14 }
 0x17c   : > { %v402_v28 = vmul.f32 %v398_v27, %v1660_v31 }
 0x17d   : > { %v390_v18 = vsub.f32 1.5, %v389_v15 }
 0x17e   : > { %408 = vrot.lane.b32.xlu1 %v400_v16, %s1440_s20 }
 0x17f   : > { %v391_v21 = vmul.f32 %v1286_v6, %v390_v18 }
 0x181   : > { %v395_v22 = vsel %vm394_vm9, %v1286_v6, %v391_v21 }
 0x182   : > { %v399_v24 = vmul.f32 %v395_v22, %v1682_v20 }
 0x184   : > { %441 = vperm.xlu2 %1265, %v399_v24   ;;  %v403_v19 = vmul.f32 %v399_v24, %v335_v41 }
 0x186   : > { %431 = vperm.xlu1 %1266, %v397_v1   ;;  %414 = vrot.lane.b32.xlu0 %v403_v19, %s1440_s20 }
 0x18c   : > { %436 = vperm.xlu2 %1265, %v398_v27  }
 0x18e   : > { %426 = vperm.xlu1 %1266, %v396_v12   ;;  %412 = vrot.lane.b32.xlu0 %v402_v28, %s1440_s20  ;;  %s234_s20 = scalar_lea.vmem [#allocation7], %s1169_s11 }
 0x18f   : > { %s1076_s24 = sshll.u32 %s234_s20, 4  ;;  %s1077_s24 = int_to_ptr.vmem [resolvable:$true] %s1076_s24 }
 0x194   : > { %1267 = vset.pattern.permute.xlu2 %v1441_v29 }
 0x1de   : > { %v442_v38 = vpop.permute.xlu2 %441 }
 0x1df   : > { %v447_v42 = vmul.f32 %v442_v38, %v1645_v10 }
 0x1e6   : > { %v437_v39 = vpop.permute.xlu2 %436 }
 0x1e7   : > { %v446_v43 = vmul.f32 %v437_v39, %v1642_v9  ;;  %v476_v9 = vld [vmem:[#allocation5] sm:$0xff] }
 0x1e8   : > { %v411_v30 = vpop.permute.xlu1 %410 }
 0x1e9   : > { %v421_v31 = vsub.f32 %v1667_v59, %v411_v30 }
 0x1f0   : > { %v409_v34 = vpop.permute.xlu1 %408 }
 0x1f1   : > { %v420_v36 = vsub.f32 %v1673_v4, %v409_v34 }
 0x1f8   : > { %v415_v32 = vpop.permute.xlu0 %414  ;;  %v432_v41 = vpop.permute.xlu1 %431 }
 0x1f9   : > { %v423_v33 = vsub.f32 %v1682_v20, %v415_v32  ;;  %v445_v46 = vmul.f32 %v432_v41, %v1639_v8  ;;  %v477_v8 = vld [vmem:[#allocation5 + $0x8] sm:$0xff] }
 0x1fb   : > { %465 = vperm.xlu0 %1268, %v423_v33  }
 0x200   : > { %v413_v35 = vpop.permute.xlu0 %412  ;;  %v427_v51 = vpop.permute.xlu1 %426 }
 0x201   : > { %v422_v37 = vsub.f32 %v1688_v25, %v413_v35  ;;  %v444_v53 = vmul.f32 %v427_v51, %v1636_v7  ;;  %v478_v7 = vld [vmem:[#allocation5 + $0x10] sm:$0xff] }
 0x203   : > { %450 = vperm.xlu0 %1268, %v420_v36   ;;  %460 = vperm.xlu2 %1267, %v422_v37  }
 0x20b   : > { %455 = vperm.xlu2 %1267, %v421_v31  }
 0x25d   : > { %v461_v40 = vpop.permute.xlu2 %460 }
 0x25e   : > { %v470_v47 = vadd.f32 %v461_v40, %v446_v43 }
 0x260   : > { %v474_v52 = vmax.f32 %v470_v47, 0.0 }
 0x265   : > { %v456_v44 = vpop.permute.xlu2 %455 }
 0x266   : > { %v469_v49 = vadd.f32 %v456_v44, %v445_v46 }
 0x268   : > { %v473_v54 = vmax.f32 %v469_v49, 0.0 }
 0x26d   : > { %v466_v45 = vpop.permute.xlu0 %465 }
 0x26e   : > { %v471_v48 = vadd.f32 %v466_v45, %v447_v42 }
 0x270   : > { %v475_v50 = vmax.f32 %v471_v48, 0.0 }
 0x272   : > { %505 = vmatpush.msra.mxu2 %v475_v50 }
 0x274   : > { %506 = vmatpush.msra.mxu2 %v474_v52 }
 0x275   : > { %v451_v55 = vpop.permute.xlu0 %450 }
 0x276   : > { %v468_v56 = vadd.f32 %v451_v55, %v444_v53  ;;  %507 = vmatpush.msra.mxu2 %v473_v54 }
 0x278   : > { %v472_v10 = vmax.f32 %v468_v56, 0.0 }
 0x27a   : > { %508 = vmatpush.msra.mxu2 %v472_v10 }
 0x27b   : > { %1174 = vmatmul.msk.f32.vlgmr.msra.gmra.mxu2 %vm480_vm13, %v476_v9 }
 0x27c   : > { %789 = vmatpush.msrb.mxu2 %v1438_v0 }
 0x27e   : > { %790 = vmatpush.msrb.mxu2 %v1438_v0 }
 0x280   : > { %791 = vmatpush.msrb.mxu2 %v1438_v0 }
 0x282   : > { %792 = vmatpush.msrb.mxu2 %v1438_v0 }
 0x283   : > { %1175 = vmatmul.msk.f32.gmra.mxu2 %vm480_vm13, %v477_v8 }
 0x284   : > { %793 = vmatpush.msrb.mxu2 %v1438_v0 }
 0x286   : > { %794 = vmatpush.msrb.mxu2 %v1438_v0 }
 0x288   : > { %795 = vmatpush.msrb.mxu2 %v1438_v0 }
 0x28a   : > { %796 = vmatpush.msrb.mxu2 %v1438_v0 }
 0x28b   : > { %1176 = vmatmul.msk.f32.gmra.mxu2 %vm480_vm13, %v478_v7 }
 0x28c   : > { %797 = vmatpush.msrb.mxu2 %v1438_v0 }
 0x28e   : > { %798 = vmatpush.msrb.mxu2 %v1438_v0 }
 0x290   : > { %799 = vmatpush.msrb.mxu2 %v1438_v0 }
 0x292   : > { %800 = vmatpush.msrb.mxu2 %v1438_v0 }
 0x293   : > { %1177 = vmatmul.msk.f32.gmra.mxu2 %vm480_vm13, %v479_v57 }
 0x294   : > { %801 = vmatpush.msrb.mxu2 %v1438_v0 }
 0x296   : > { %802 = vmatpush.msrb.mxu2 %v1438_v0 }
 0x298   : > { %803 = vmatpush.msrb.mxu2 %v1438_v0 }
 0x29a   : > { %804 = vmatpush.msrb.mxu2 %v1438_v0 }
 0x2fe   : > { %v1722_v58 = vpop.f32.mrf.mxu2 }
 0x2ff   : > { %542 = vmatmul.f32.vlgmr.msra.gmra.mxu3 %v1722_v58  ;;  %v522_v63 = vmul.f32 %v1722_v58, %v1722_v58 }
 0x306   : > { %v1725_v60 = vpop.f32.mrf.mxu2 }
 0x307   : > { %545 = vmatmul.f32.gmra.mxu3 %v1725_v60  ;;  %v523_v0 = vmul.f32 %v1725_v60, %v1725_v60 }
 0x30e   : > { %v1728_v61 = vpop.f32.mrf.mxu2 }
 0x30f   : > { %548 = vmatmul.f32.gmra.mxu3 %v1728_v61  ;;  %v524_v1 = vmul.f32 %v1728_v61, %v1728_v61 }
 0x316   : > { %v1731_v62 = vpop.f32.mrf.mxu2 }
 0x317   : > { %551 = vmatmul.f32.gmra.mxu3 %v1731_v62  ;;  %v525_v2 = vmul.f32 %v1731_v62, %v1731_v62 }
 0x31f   : > { %554 = vmatmul.f32.gmra.mxu3 %v522_v63 }
 0x327   : > { %557 = vmatmul.f32.gmra.mxu3 %v523_v0 }
 0x32f   : > { %560 = vmatmul.f32.gmra.mxu3 %v524_v1 }
 0x337   : > { %563 = vmatmul.f32.gmra.mxu3 %v525_v2 }
 0x382   : > { %v543_v3 = vpop.f32.mrf.mxu3 }
 0x383   : > { %v1746_v17 = vmul.f32 0.0078125, %v543_v3 }
 0x385   : > { %v575_v24 = vmul.f32 %v1746_v17, %v1746_v17 }
 0x38a   : > { %v546_v5 = vpop.f32.mrf.mxu3 }
 0x38b   : > { %v1742_v13 = vmul.f32 0.0078125, %v546_v5 }
 0x38d   : > { %v576_v15 = vmul.f32 %v1742_v13, %v1742_v13 }
 0x392   : > { %v549_v6 = vpop.f32.mrf.mxu3 }
 0x393   : > { %v1748_v21 = vmul.f32 0.0078125, %v549_v6 }
 0x395   : > { %v577_v27 = vmul.f32 %v1748_v21, %v1748_v21 }
 0x39a   : > { %v552_v11 = vpop.f32.mrf.mxu3 }
 0x39b   : > { %v1754_v32 = vmul.f32 0.0078125, %v552_v11 }
 0x39d   : > { %v578_v38 = vmul.f32 %v1754_v32, %v1754_v32 }
 0x3a2   : > { %v555_v12 = vpop.f32.mrf.mxu3 }
 0x3a3   : > { %v571_v22 = vmul.f32 0.0078125, %v555_v12 }
 0x3a5   : > { %v579_v28 = vsub.f32 %v571_v22, %v575_v24 }
 0x3a7   : > { %v583_v33 = vmax.f32 %v579_v28, 0.0 }
 0x3a9   : > { %v587_v39 = vadd.f32 1e-05, %v583_v33 }
 0x3aa   : > { %v558_v14 = vpop.f32.mrf.mxu3 }
 0x3ab   : > { %v572_v16 = vmul.f32 0.0078125, %v558_v14  ;;  %vm597_vm8 = vweird.f32 %v587_v39 }
 0x3ad   : > { %v580_v18 = vsub.f32 %v572_v16, %v576_v15 }
 0x3af   : > { %v584_v23 = vmax.f32 %v580_v18, 0.0 }
 0x3b1   : > { %v588_v19 = vadd.f32 1e-05, %v584_v23 }
 0x3b2   : > { %v561_v26 = vpop.f32.mrf.mxu3 }
 0x3b3   : > { %1287 = vrsqrt.f32 %v588_v19  ;;  %v573_v29 = vmul.f32 0.0078125, %v561_v26  ;;  %vm607_vm15 = vweird.f32 %v588_v19 }
 0x3b5   : > { %v581_v30 = vsub.f32 %v573_v29, %v577_v27 }
 0x3b7   : > { %v585_v34 = vmax.f32 %v581_v30, 0.0 }
 0x3b9   : > { %v1288_v35 = vpop.eup %1287  ;;  %v589_v36 = vadd.f32 1e-05, %v585_v34 }
 0x3ba   : > { %v602_v37 = vmul.f32 %v1288_v35, %v588_v19  ;;  %v564_v31 = vpop.f32.mrf.mxu3  ;;  %vm608_vm14 = vweird.f32 %v1288_v35  ;;  %v1444_v19 = vmov 2  }
 0x3bb   : > { %1289 = vrsqrt.f32 %v589_v36  ;;  %v574_v40 = vmul.f32 0.0078125, %v564_v31  ;;  %vm609_vm0 = vmor %vm607_vm15, %vm608_vm14  ;;  %vm617_vm2 = vweird.f32 %v589_v36  ;;  %1269 = vset.pattern.permute.xlu1 %v1444_v19  ;;  %1270 = vset.pattern.permute.xlu2 %v1444_v19 }
 0x3bc   : > { %v603_v41 = vmul.f32 %v1288_v35, %v602_v37  ;;  %1291 = vrsqrt.f32 %v587_v39 }
 0x3bd   : > { %v582_v42 = vsub.f32 %v574_v40, %v578_v38 }
 0x3be   : > { %v604_v43 = vmul.f32 0.5, %v603_v41 }
 0x3bf   : > { %v586_v44 = vmax.f32 %v582_v42, 0.0 }
 0x3c0   : > { %v605_v45 = vsub.f32 1.5, %v604_v43 }
 0x3c1   : > { %v1290_v46 = vpop.eup %1289  ;;  %v590_v47 = vadd.f32 1e-05, %v586_v44 }
 0x3c2   : > { %v612_v48 = vmul.f32 %v1290_v46, %v589_v36  ;;  %v606_v49 = vmul.f32 %v1288_v35, %v605_v45  ;;  %v1292_v52 = vpop.eup %1291  ;;  %vm618_vm1 = vweird.f32 %v1290_v46  ;;  %v1446_v36 = vmov 3  }
 0x3c3   : > { %1293 = vrsqrt.f32 %v590_v47  ;;  %v592_v54 = vmul.f32 %v1292_v52, %v587_v39  ;;  %vm619_vm3 = vmor %vm617_vm2, %vm618_vm1  ;;  %vm627_vm5 = vweird.f32 %v590_v47  ;;  %vm598_vm7 = vweird.f32 %v1292_v52  ;;  %1272 = vset.pattern.permute.xlu0 %v1446_v36 }
 0x3c4   : > { %v610_v50 = vsel %vm609_vm0, %v1288_v35, %v606_v49  ;;  %v613_v51 = vmul.f32 %v1290_v46, %v612_v48  ;;  %vm599_vm9 = vmor %vm597_vm8, %vm598_vm7 }
 0x3c5   : > { %637 = vrot.lane.b32.xlu0 %v610_v50, %s1442_s26  ;;  %v593_v57 = vmul.f32 %v1292_v52, %v592_v54 }
 0x3c6   : > { %v614_v53 = vmul.f32 0.5, %v613_v51 }
 0x3c7   : > { %v594_v1 = vmul.f32 0.5, %v593_v57 }
 0x3c8   : > { %v615_v55 = vsub.f32 1.5, %v614_v53 }
 0x3c9   : > { %v1294_v56 = vpop.eup %1293  ;;  %v595_v5 = vsub.f32 1.5, %v594_v1 }
 0x3ca   : > { %v622_v10 = vmul.f32 %v1294_v56, %v590_v47  ;;  %v616_v9 = vmul.f32 %v1290_v46, %v615_v55  ;;  %vm628_vm4 = vweird.f32 %v1294_v56 }
 0x3cb   : > { %vm629_vm6 = vmor %vm627_vm5, %vm628_vm4  ;;  %v596_v6 = vmul.f32 %v1292_v52, %v595_v5 }
 0x3cc   : > { %v620_v8 = vsel %vm619_vm3, %v1290_v46, %v616_v9  ;;  %v623_v7 = vmul.f32 %v1294_v56, %v622_v10 }
 0x3cd   : > { %639 = vrot.lane.b32.xlu2 %v620_v8, %s1442_s26  ;;  %v600_v11 = vsel %vm599_vm9, %v1292_v52, %v596_v6  ;;  %v742_v8 = vld [vmem:[#allocation5 + $0x30] sm:$0xff] }
 0x3ce   : > { %v624_v63 = vmul.f32 0.5, %v623_v7  ;;  %v743_v7 = vld [vmem:[#allocation5 + $0x38] sm:$0xff] }
 0x3d0   : > { %v625_v0 = vsub.f32 1.5, %v624_v63 }
 0x3d2   : > { %v626_v2 = vmul.f32 %v1294_v56, %v625_v0 }
 0x3d4   : > { %v630_v3 = vsel %vm629_vm6, %v1294_v56, %v626_v2 }
 0x3d5   : > { %641 = vrot.lane.b32.xlu1 %v630_v3, %s1442_s26 }
 0x3dd   : > { %635 = vrot.lane.b32.xlu1 %v600_v11, %s1442_s26  ;;  %s1379_s26 = scalar_lea.hbm %s1378_s21, 4 }
 0x3de   : > { %p1380_p1 = scmp.ne.s32.totalorder %s1378_s21, %s1379_s26 }
 0x3e0   : > { %p1381_p4 = pnand %p1380_p1, %p1546_p0 }
 0x3e2   : > { %p1382_p8 = pneg %p1381_p4 }
 0x427   : > { %v640_v12 = vpop.permute.xlu2 %639 }
 0x428   : > { %v649_v14 = vmul.f32 %v640_v12, %v1688_v25 }
 0x42a   : > { %659 = vrot.lane.b32.xlu0 %v649_v14, %s1443_s30 }
 0x437   : > { %v638_v15 = vpop.permute.xlu0 %637 }
 0x438   : > { %v648_v16 = vmul.f32 %v638_v15, %v1667_v59 }
 0x43a   : > { %657 = vrot.lane.b32.xlu1 %v648_v16, %s1443_s30 }
 0x447   : > { %v642_v18 = vpop.permute.xlu1 %641 }
 0x448   : > { %v650_v22 = vmul.f32 %v642_v18, %v1682_v20 }
 0x44a   : > { %661 = vrot.lane.b32.xlu2 %v650_v22, %s1443_s30 }
 0x44f   : > { %v636_v23 = vpop.permute.xlu1 %635 }
 0x450   : > { %v647_v24 = vmul.f32 %v636_v23, %v1673_v4 }
 0x452   : > { %655 = vrot.lane.b32.xlu2 %v647_v24, %s1443_s30 }
 0x49c   : > { %v660_v26 = vpop.permute.xlu0 %659 }
 0x49d   : > { %v669_v27 = vmul.f32 %v660_v26, %v1748_v21 }
 0x49f   : > { %679 = vrot.lane.b32.xlu1 %v669_v27, %s1445_s5 }
 0x4a4   : > { %v662_v28 = vpop.permute.xlu2 %661 }
 0x4a5   : > { %v670_v29 = vmul.f32 %v662_v28, %v1754_v32 }
 0x4a7   : > { %704 = vperm.xlu1 %1269, %v650_v22   ;;  %681 = vrot.lane.b32.xlu0 %v670_v29, %s1445_s5 }
 0x4ac   : > { %v656_v30 = vpop.permute.xlu2 %655  ;;  %v658_v33 = vpop.permute.xlu1 %657 }
 0x4ad   : > { %v667_v34 = vmul.f32 %v656_v30, %v1746_v17  ;;  %v668_v35 = vmul.f32 %v658_v33, %v1742_v13 }
 0x4af   : > { %696 = vperm.xlu1 %1269, %v648_v16   ;;  %675 = vrot.lane.b32.xlu0 %v667_v34, %s1445_s5 }
 0x4b0   : > { %677 = vrot.lane.b32.xlu2 %v668_v35, %s1445_s5  ;;  %s1383_s5 = scalar_lea.hbm %s1872_s4, 32 }
 0x4b1   : > { %p1385_p2 = scmp.lt.s32.totalorder %s1383_s5, %s1379_s26 }
 0x4b3   : > { %p1386_p9 = por %p1385_p2, %p1384_p7 }
 0x4b5   : > { %p1387_p10 = pnand %p1386_p9, %p1382_p8 }
 0x4b7   : > { %692 = vperm.xlu1 %1269, %v647_v24  }
 0x4b8   : > { %700 = vperm.xlu2 %1270, %v649_v14  }
 0x4c0   : > { %1271 = vset.pattern.permute.xlu2 %v1446_v36 }
 0x50a   : > { %v678_v32 = vpop.permute.xlu2 %677 }
 0x50b   : > { %v688_v38 = vsub.f32 %v1667_v59, %v678_v32 }
 0x511   : > { %v680_v21 = vpop.permute.xlu1 %679 }
 0x512   : > { %v689_v37 = vsub.f32 %v1688_v25, %v680_v21  ;;  %v701_v40 = vpop.permute.xlu2 %700 }
 0x513   : > { %v709_v44 = vmul.f32 %v701_v40, %v1728_v61 }
 0x514   : > { %723 = vperm.xlu2 %1271, %v689_v37  }
 0x519   : > { %v682_v31 = vpop.permute.xlu0 %681  ;;  %v705_v41 = vpop.permute.xlu1 %704 }
 0x51a   : > { %v690_v17 = vsub.f32 %v1682_v20, %v682_v31  ;;  %v710_v45 = vmul.f32 %v705_v41, %v1731_v62  ;;  %v740_v62 = vld [vmem:[#allocation5 + $0x20] sm:$0xff] }
 0x51c   : > { %728 = vperm.xlu0 %1272, %v690_v17   ;;  %718 = vperm.xlu2 %1271, %v688_v38  }
 0x521   : > { %v676_v13 = vpop.permute.xlu0 %675  ;;  %v697_v43 = vpop.permute.xlu1 %696 }
 0x522   : > { %v687_v39 = vsub.f32 %v1673_v4, %v676_v13  ;;  %v708_v48 = vmul.f32 %v697_v43, %v1725_v60  ;;  %v741_v60 = vld [vmem:[#allocation5 + $0x28] sm:$0xff] }
 0x524   : > { %713 = vperm.xlu0 %1272, %v687_v39  }
 0x529   : > { %v693_v53 = vpop.permute.xlu1 %692 }
 0x52a   : > { %v707_v55 = vmul.f32 %v693_v53, %v1722_v58 }
 0x56e   : > { %v724_v42 = vpop.permute.xlu2 %723 }
 0x56f   : > { %v733_v49 = vadd.f32 %v724_v42, %v709_v44 }
 0x571   : > { %v737_v54 = vmax.f32 %v733_v49, 0.0 }
 0x576   : > { %v719_v46 = vpop.permute.xlu2 %718 }
 0x577   : > { %v732_v51 = vadd.f32 %v719_v46, %v708_v48 }
 0x579   : > { %v736_v56 = vmax.f32 %v732_v51, 0.0 }
 0x58e   : > { %v729_v47 = vpop.permute.xlu0 %728 }
 0x58f   : > { %v734_v50 = vadd.f32 %v729_v47, %v710_v45 }
 0x591   : > { %v738_v52 = vmax.f32 %v734_v50, 0.0 }
 0x593   : > { %768 = vmatpush.msrb.mxu0 %v738_v52 }
 0x595   : > { %769 = vmatpush.msrb.mxu0 %v737_v54 }
 0x596   : > { %v714_v10 = vpop.permute.xlu0 %713 }
 0x597   : > { %v731_v9 = vadd.f32 %v714_v10, %v707_v55  ;;  %770 = vmatpush.msrb.mxu0 %v736_v56 }
 0x599   : > { %v735_v61 = vmax.f32 %v731_v9, 0.0 }
 0x59b   : > { %771 = vmatpush.msrb.mxu0 %v735_v61 }
 0x59c   : > { %1178 = vmatmul.msk.f32.vlgmr.msrb.gmra.mxu0 %vm480_vm13, %v740_v62 }
 0x5a4   : > { %1179 = vmatmul.msk.f32.gmra.mxu0 %vm480_vm13, %v741_v60 }
 0x5ac   : > { %1180 = vmatmul.msk.f32.gmra.mxu0 %vm480_vm13, %v742_v8 }
 0x5b4   : > { %1181 = vmatmul.msk.f32.gmra.mxu0 %vm480_vm13, %v743_v7 }
 0x619   : > { %v1778_v58 = vpop.f32.mrf.mxu0 }
 0x61a   : > { %805 = vmatmul.f32.vlgmr.msrb.gmra.mxu2 %v1778_v58  ;;  %v785_v1 = vmul.f32 %v1778_v58, %v1778_v58 }
 0x621   : > { %v1781_v57 = vpop.f32.mrf.mxu0 }
 0x622   : > { %808 = vmatmul.f32.gmra.mxu2 %v1781_v57  ;;  %v786_v2 = vmul.f32 %v1781_v57, %v1781_v57 }
 0x629   : > { %v1784_v63 = vpop.f32.mrf.mxu0 }
 0x62a   : > { %811 = vmatmul.f32.gmra.mxu2 %v1784_v63  ;;  %v787_v3 = vmul.f32 %v1784_v63, %v1784_v63 }
 0x631   : > { %v1787_v0 = vpop.f32.mrf.mxu0 }
 0x632   : > { %814 = vmatmul.f32.gmra.mxu2 %v1787_v0  ;;  %v788_v5 = vmul.f32 %v1787_v0, %v1787_v0 }
 0x63a   : > { %817 = vmatmul.f32.gmra.mxu2 %v785_v1 }
 0x642   : > { %820 = vmatmul.f32.gmra.mxu2 %v786_v2 }
 0x64a   : > { %823 = vmatmul.f32.gmra.mxu2 %v787_v3 }
 0x652   : > { %826 = vmatmul.f32.gmra.mxu2 %v788_v5 }
 0x69d   : > { %v806_v6 = vpop.f32.mrf.mxu2 }
 0x69e   : > { %v1802_v24 = vmul.f32 0.0078125, %v806_v6 }
 0x6a0   : > { %v838_v29 = vmul.f32 %v1802_v24, %v1802_v24 }
 0x6a5   : > { %v809_v11 = vpop.f32.mrf.mxu2 }
 0x6a6   : > { %v1798_v16 = vmul.f32 0.0078125, %v809_v11 }
 0x6a8   : > { %v839_v22 = vmul.f32 %v1798_v16, %v1798_v16 }
 0x6ad   : > { %v812_v12 = vpop.f32.mrf.mxu2 }
 0x6ae   : > { %v1804_v26 = vmul.f32 0.0078125, %v812_v12 }
 0x6b0   : > { %v840_v34 = vmul.f32 %v1804_v26, %v1804_v26 }
 0x6b5   : > { %v815_v14 = vpop.f32.mrf.mxu2 }
 0x6b6   : > { %v1810_v37 = vmul.f32 0.0078125, %v815_v14 }
 0x6b8   : > { %v841_v40 = vmul.f32 %v1810_v37, %v1810_v37 }
 0x6bd   : > { %v818_v15 = vpop.f32.mrf.mxu2 }
 0x6be   : > { %v834_v27 = vmul.f32 0.0078125, %v818_v15 }
 0x6c0   : > { %v842_v35 = vsub.f32 %v834_v27, %v838_v29 }
 0x6c2   : > { %v846_v32 = vmax.f32 %v842_v35, 0.0 }
 0x6c4   : > { %v850_v41 = vadd.f32 1e-05, %v846_v32 }
 0x6c5   : > { %v821_v18 = vpop.f32.mrf.mxu2 }
 0x6c6   : > { %v835_v23 = vmul.f32 0.0078125, %v821_v18  ;;  %vm860_vm5 = vweird.f32 %v850_v41 }
 0x6c8   : > { %v843_v19 = vsub.f32 %v835_v23, %v839_v22 }
 0x6ca   : > { %v847_v28 = vmax.f32 %v843_v19, 0.0 }
 0x6cc   : > { %v851_v30 = vadd.f32 1e-05, %v847_v28 }
 0x6cd   : > { %v824_v33 = vpop.f32.mrf.mxu2 }
 0x6ce   : > { %1295 = vrsqrt.f32 %v851_v30  ;;  %v836_v36 = vmul.f32 0.0078125, %v824_v33  ;;  %vm870_vm11 = vweird.f32 %v851_v30 }
 0x6d0   : > { %v844_v21 = vsub.f32 %v836_v36, %v840_v34 }
 0x6d2   : > { %v848_v31 = vmax.f32 %v844_v21, 0.0 }
 0x6d4   : > { %v1296_v38 = vpop.eup %1295  ;;  %v852_v17 = vadd.f32 1e-05, %v848_v31 }
 0x6d5   : > { %v865_v13 = vmul.f32 %v1296_v38, %v851_v30  ;;  %v827_v39 = vpop.f32.mrf.mxu2  ;;  %vm871_vm10 = vweird.f32 %v1296_v38  ;;  %v1449_v30 = vmov 4  }
 0x6d6   : > { %1297 = vrsqrt.f32 %v852_v17  ;;  %v837_v42 = vmul.f32 0.0078125, %v827_v39  ;;  %vm872_vm12 = vmor %vm870_vm11, %vm871_vm10  ;;  %vm880_vm15 = vweird.f32 %v852_v17  ;;  %1273 = vset.pattern.permute.xlu1 %v1449_v30  ;;  %1274 = vset.pattern.permute.xlu2 %v1449_v30 }
 0x6d7   : > { %v866_v43 = vmul.f32 %v1296_v38, %v865_v13  ;;  %1299 = vrsqrt.f32 %v850_v41 }
 0x6d8   : > { %v845_v44 = vsub.f32 %v837_v42, %v841_v40 }
 0x6d9   : > { %v867_v45 = vmul.f32 0.5, %v866_v43 }
 0x6da   : > { %v849_v46 = vmax.f32 %v845_v44, 0.0 }
 0x6db   : > { %v868_v47 = vsub.f32 1.5, %v867_v45  ;;  %v1452_v45 = vmov 6  }
 0x6dc   : > { %v1298_v48 = vpop.eup %1297  ;;  %v853_v49 = vadd.f32 1e-05, %v849_v46 }
 0x6dd   : > { %v875_v50 = vmul.f32 %v1298_v48, %v852_v17  ;;  %v869_v51 = vmul.f32 %v1296_v38, %v868_v47  ;;  %v1300_v54 = vpop.eup %1299  ;;  %vm881_vm14 = vweird.f32 %v1298_v48  ;;  %v1451_v17 = vmov 5  }
 0x6de   : > { %1301 = vrsqrt.f32 %v853_v49  ;;  %v855_v56 = vmul.f32 %v1300_v54, %v850_v41  ;;  %vm882_vm0 = vmor %vm880_vm15, %vm881_vm14  ;;  %vm890_vm2 = vweird.f32 %v853_v49  ;;  %vm861_vm4 = vweird.f32 %v1300_v54  ;;  %1276 = vset.pattern.permute.xlu0 %v1451_v17 }
 0x6df   : > { %v873_v52 = vsel %vm872_vm12, %v1296_v38, %v869_v51  ;;  %v876_v53 = vmul.f32 %v1298_v48, %v875_v50  ;;  %vm862_vm6 = vmor %vm860_vm5, %vm861_vm4 }
 0x6e0   : > { %900 = vrot.lane.b32.xlu0 %v873_v52, %s1447_s23  ;;  %v856_v7 = vmul.f32 %v1300_v54, %v855_v56 }
 0x6e1   : > { %v877_v55 = vmul.f32 0.5, %v876_v53 }
 0x6e2   : > { %v857_v3 = vmul.f32 0.5, %v856_v7 }
 0x6e3   : > { %v878_v10 = vsub.f32 1.5, %v877_v55 }
 0x6e4   : > { %v1302_v9 = vpop.eup %1301  ;;  %v858_v11 = vsub.f32 1.5, %v857_v3 }
 0x6e5   : > { %v885_v61 = vmul.f32 %v1302_v9, %v853_v49  ;;  %v879_v62 = vmul.f32 %v1298_v48, %v878_v10  ;;  %vm891_vm1 = vweird.f32 %v1302_v9  ;;  %v1003_v10 = vld [vmem:[#allocation5 + $0x40] sm:$0xff] }
 0x6e6   : > { %vm892_vm3 = vmor %vm890_vm2, %vm891_vm1  ;;  %v859_v12 = vmul.f32 %v1300_v54, %v858_v11 }
 0x6e7   : > { %v883_v60 = vsel %vm882_vm0, %v1298_v48, %v879_v62  ;;  %v886_v8 = vmul.f32 %v1302_v9, %v885_v61 }
 0x6e8   : > { %902 = vrot.lane.b32.xlu2 %v883_v60, %s1447_s23  ;;  %v863_v14 = vsel %vm862_vm6, %v1300_v54, %v859_v12 }
 0x6e9   : > { %v887_v1 = vmul.f32 0.5, %v886_v8 }
 0x6eb   : > { %v888_v2 = vsub.f32 1.5, %v887_v1 }
 0x6ed   : > { %v889_v5 = vmul.f32 %v1302_v9, %v888_v2 }
 0x6ef   : > { %v893_v6 = vsel %vm892_vm3, %v1302_v9, %v889_v5  ;;  %v1005_v9 = vld [vmem:[#allocation5 + $0x50] sm:$0xff] }
 0x6f0   : > { %904 = vrot.lane.b32.xlu1 %v893_v6, %s1447_s23 }
 0x6f8   : > { %898 = vrot.lane.b32.xlu1 %v863_v14, %s1447_s23 }
 0x742   : > { %v903_v15 = vpop.permute.xlu2 %902 }
 0x743   : > { %v912_v18 = vmul.f32 %v903_v15, %v1688_v25 }
 0x745   : > { %922 = vrot.lane.b32.xlu0 %v912_v18, %s1448_s25 }
 0x752   : > { %v901_v22 = vpop.permute.xlu0 %900 }
 0x753   : > { %v911_v23 = vmul.f32 %v901_v22, %v1667_v59 }
 0x755   : > { %920 = vrot.lane.b32.xlu1 %v911_v23, %s1448_s25 }
 0x762   : > { %v905_v19 = vpop.permute.xlu1 %904 }
 0x763   : > { %v913_v27 = vmul.f32 %v905_v19, %v1682_v20 }
 0x765   : > { %924 = vrot.lane.b32.xlu2 %v913_v27, %s1448_s25 }
 0x76a   : > { %v899_v28 = vpop.permute.xlu1 %898 }
 0x76b   : > { %v910_v29 = vmul.f32 %v899_v28, %v1673_v4 }
 0x76d   : > { %918 = vrot.lane.b32.xlu2 %v910_v29, %s1448_s25 }
 0x7b7   : > { %v923_v33 = vpop.permute.xlu0 %922 }
 0x7b8   : > { %v932_v34 = vmul.f32 %v923_v33, %v1804_v26 }
 0x7ba   : > { %942 = vrot.lane.b32.xlu1 %v932_v34, %s1450_s27 }
 0x7bf   : > { %v925_v35 = vpop.permute.xlu2 %924 }
 0x7c0   : > { %v933_v36 = vmul.f32 %v925_v35, %v1810_v37 }
 0x7c2   : > { %967 = vperm.xlu1 %1273, %v913_v27   ;;  %944 = vrot.lane.b32.xlu0 %v933_v36, %s1450_s27 }
 0x7c7   : > { %v919_v21 = vpop.permute.xlu2 %918  ;;  %v921_v32 = vpop.permute.xlu1 %920 }
 0x7c8   : > { %v930_v31 = vmul.f32 %v919_v21, %v1802_v24  ;;  %v931_v38 = vmul.f32 %v921_v32, %v1798_v16 }
 0x7ca   : > { %959 = vperm.xlu1 %1273, %v911_v23   ;;  %938 = vrot.lane.b32.xlu0 %v930_v31, %s1450_s27 }
 0x7cb   : > { %940 = vrot.lane.b32.xlu2 %v931_v38, %s1450_s27 }
 0x7d2   : > { %955 = vperm.xlu1 %1273, %v910_v29  }
 0x7d3   : > { %963 = vperm.xlu2 %1274, %v912_v18  }
 0x7da   : > { %1277 = vset.pattern.permute.xlu1 %v1452_v45 }
 0x7db   : > { %1275 = vset.pattern.permute.xlu2 %v1451_v17  ;;  %1009 = vperm.xlu1 %1277, %v1673_v4  }
 0x825   : > { %v941_v37 = vpop.permute.xlu2 %940 }
 0x826   : > { %v951_v40 = vsub.f32 %v1667_v59, %v941_v37 }
 0x82c   : > { %v943_v26 = vpop.permute.xlu1 %942 }
 0x82d   : > { %v952_v13 = vsub.f32 %v1688_v25, %v943_v26  ;;  %v964_v42 = vpop.permute.xlu2 %963 }
 0x82e   : > { %v972_v46 = vmul.f32 %v964_v42, %v1784_v63 }
 0x82f   : > { %986 = vperm.xlu2 %1275, %v952_v13  }
 0x834   : > { %v945_v39 = vpop.permute.xlu0 %944  ;;  %v968_v43 = vpop.permute.xlu1 %967 }
 0x835   : > { %v953_v24 = vsub.f32 %v1682_v20, %v945_v39  ;;  %v973_v59 = vmul.f32 %v968_v43, %v1787_v0 }
 0x837   : > { %991 = vperm.xlu0 %1276, %v953_v24   ;;  %981 = vperm.xlu2 %1275, %v951_v40  }
 0x83c   : > { %v939_v16 = vpop.permute.xlu0 %938  ;;  %v960_v25 = vpop.permute.xlu1 %959 }
 0x83d   : > { %v950_v41 = vsub.f32 %v1673_v4, %v939_v16  ;;  %v971_v48 = vmul.f32 %v960_v25, %v1781_v57  ;;  %v1004_v57 = vld [vmem:[#allocation5 + $0x48] sm:$0xff] }
 0x83f   : > { %976 = vperm.xlu0 %1276, %v950_v41  }
 0x844   : > { %v956_v53 = vpop.permute.xlu1 %955 }
 0x845   : > { %v970_v55 = vmul.f32 %v956_v53, %v1778_v58  ;;  %v1006_v58 = vld [vmem:[#allocation5 + $0x58] sm:$0xff] }
 0x847   : > { %1278 = vset.pattern.permute.xlu0 %v1452_v45 }
 0x84d   : > { %v1010_v61 = vpop.permute.xlu1 %1009 }
 0x889   : > { %v987_v44 = vpop.permute.xlu2 %986 }
 0x88a   : > { %v996_v49 = vadd.f32 %v987_v44, %v972_v46 }
 0x88c   : > { %v1000_v54 = vmax.f32 %v996_v49, 0.0 }
 0x891   : > { %v982_v20 = vpop.permute.xlu2 %981 }
 0x892   : > { %v995_v51 = vadd.f32 %v982_v20, %v971_v48 }
 0x894   : > { %v999_v4 = vmax.f32 %v995_v51, 0.0 }
 0x8a9   : > { %v992_v47 = vpop.permute.xlu0 %991 }
 0x8aa   : > { %v997_v50 = vadd.f32 %v992_v47, %v973_v59 }
 0x8ac   : > { %v1001_v52 = vmax.f32 %v997_v50, 0.0 }
 0x8ae   : > { %1048 = vmatpush.msra.mxu0 %v1001_v52 }
 0x8b0   : > { %1049 = vmatpush.msra.mxu0 %v1000_v54 }
 0x8b1   : > { %v977_v63 = vpop.permute.xlu0 %976 }
 0x8b2   : > { %v994_v56 = vadd.f32 %v977_v63, %v970_v55  ;;  %1050 = vmatpush.msra.mxu0 %v999_v4 }
 0x8b4   : > { %v998_v0 = vmax.f32 %v994_v56, 0.0 }
 0x8b6   : > { %1051 = vmatpush.msra.mxu0 %v998_v0 }
 0x8b7   : > { %1182 = vmatmul.msk.f32.vlgmr.msra.gmra.mxu0 %vm480_vm13, %v1003_v10 }
 0x8bf   : > { %1183 = vmatmul.msk.f32.gmra.mxu0 %vm480_vm13, %v1004_v57 }
 0x8c7   : > { %1184 = vmatmul.msk.f32.gmra.mxu0 %vm480_vm13, %v1005_v9 }
 0x8cf   : > { %1185 = vmatmul.msk.f32.gmra.mxu0 %vm480_vm13, %v1006_v58 }
 0x934   : > { %v1053_v62 = vpop.f32.mrf.mxu0 }
 0x935   : > { %v1054_v60 = vadd.f32 %v1053_v62, %v1010_v61 }
 0x937   : > { %1062 = vst [vmem:[%s234_s20] sm:$0xf] %v1054_v60 }
 0x938   : > { %1390 = shalt.err (!%p1387_p10)
}
 0x939   : > { %1197 = dma.vmem_to_hbm [thread:$0]  (%p1546_p0), %s1077_s24, 64, %s1079_s6, %s1064_s7  }
 0x93c   : > { %v1056_v8 = vpop.f32.mrf.mxu0 }
 0x944   : > { %v1058_v7 = vpop.f32.mrf.mxu0 }
 0x94c   : > { %v1060_v1 = vpop.f32.mrf.mxu0 }
 0x94d PF: > { %p1214_p11 = scmp.ge.s32.totalorder %s1433_s18, 2  ;;  %s1090_s10 = sand.u32 1, %s1421_s15  }
 0x94e   : > { %s1091_s27 = scalar_lea.sflag [#allocation4], %s1090_s10 }
 0x94f   : > { %p1208_p12 = pnand %p1214_p11, %p1513_p6 }
 0x951   : > { %p1209_p13 = pneg %p1208_p12 }
 0x953   : > { %1416 = dma.done.wait (%p1209_p13), %s1091_s27, 64  }
 0x954   : > { %1418 = vsyncadd (%p1209_p13), %s1091_s27, 4294967232  ;;  %p18_p0 = scmp.ge.s32.totalorder %s1530_s29, 10   ;;  %s1878_s15 = smov %s1425_s16 }
 0x955   : > { %s1879_s16 = smov %s1429_s17  ;;  %s1880_s17 = smov %s1542_s8 }
 0x956   : > { %s1881_s18 = smov %s1530_s29  ;;  %20 = sbr.rel (!%p18_p0) target bundleno = 6 (0x6), region = 87 }
 0x95b   :  { %1097 = vsyncpa [#allocation3], 1 }
 0x95c   :  { %1099 = vsyncpa [#allocation3 + $0x1], 1 }
 0x95d   :  { %1100 = vsyncpa [#allocation6], 1 }
 0x95e   :  { %1101 = vsyncpa [#allocation4], 1 }
 0x95f   :  { %1103 = vsyncpa [#allocation4 + $0x1], 1 }

</bundles_post_ra>
